<compile_context>
chip_gen: v6e
topology: v6e:2x2x1
jax: 0.10.0
libtpu: 0.0.40
codegen_flags: <defaults>
</compile_context>

<pallas_src>
import jax
import jax.numpy as jnp
from jax.experimental import pallas as pl
from jax.experimental.pallas import tpu as pltpu


def _round_up(v, m):
    return (v + m - 1) // m * m


def _choose_row_tile(n, cap=512):
    """Pick (TN, padded_N) for the patch-row axis.

    Prefer the largest multiple-of-8 divisor of n that is <= cap (bounded,
    double-bufferable working set; many pipeline steps for megacore / dual-TC
    sharding).  Awkward n: small n -> full-dim block (always legal even when
    not 8-aligned); large n -> pad n to a multiple of cap so the tile never
    scales with n.
    """
    best = 0
    for tn in range(8, min(n, cap) + 1, 8):
        if n % tn == 0:
            best = tn
    if best:
        return best, n
    if n <= 2 * cap:
        return n, n
    return cap, _round_up(n, cap)


def _patch_embed_kernel(patches_ref, w_ref, pos_ref, out_ref):
    # patches_ref: (1, TN, K) bf16  one row-tile of one image's flattened patches
    # w_ref:       (K, E)     bf16  conv weight as a projection matrix (resident)
    # pos_ref:     (TN, E)    f32   positions[1:] + conv bias for these rows
    # out_ref:     (1, TN, E) bf16  aligned output tile (row 0 of the block = a patch row)
    proj = jnp.dot(patches_ref[0], w_ref[...],
                   preferred_element_type=jnp.float32)       # MXU, f32 accumulation
    out_ref[0, :, :] = (proj + pos_ref[...]).astype(out_ref.dtype)


def patch_embedding(x, conv_w, conv_b, cls_token, positions, *, patch_size,
                    data_format="NCHW", out_dtype=jnp.float32):
    """ViT patch embedding forward.

    x: (B, C, H, W) for data_format="NCHW" (PyTorch layout) or (B, H, W, C) for
    "NHWC".  Returns (B, N + 1, E) in `out_dtype` (default float32 to match the
    PyTorch module; bfloat16 skips the final upcast pass entirely).
    """
    p = patch_size
    E = conv_w.shape[0]
    if data_format == "NCHW":
        B, C, H, W = x.shape
    elif data_format == "NHWC":
        B, H, W, C = x.shape
    else:
        raise ValueError(f"unsupported data_format: {data_format}")
    hp, wp = H // p, W // p
    N = hp * wp
    K = C * p * p

    # ---- im2col glue (reshape/transpose only; cast to bf16 first => half the bytes moved)
    xb = x.astype(jnp.bfloat16)
    if data_format == "NCHW":
        # (B,C,hp,p,wp,p) -> (B,hp,wp,C,p,p) -> (B,N,K); K flatten order = (c, i, j)
        patches = xb.reshape(B, C, hp, p, wp, p).transpose(0, 2, 4, 1, 3, 5).reshape(B, N, K)
        w_mat = conv_w.reshape(E, K).T.astype(jnp.bfloat16)              # (K, E), rows (c,i,j)
    else:
        # lane-friendly: channels stay in the minor dim; K flatten order = (i, j, c)
        patches = xb.reshape(B, hp, p, wp, p, C).transpose(0, 1, 3, 2, 4, 5).reshape(B, N, K)
        w_mat = conv_w.transpose(2, 3, 1, 0).reshape(K, E).astype(jnp.bfloat16)

    pos = positions.reshape(N + 1, E).astype(jnp.float32)
    # Fold the conv bias into the patch-row positional table (kept in f32).
    pos_patch = pos[1:] + conv_b.reshape(1, E).astype(jnp.float32)       # (N, E)

    # ---- row tiling (no K/E padding: full-dim minor blocks are always legal) ----
    TN, N_pad = _choose_row_tile(N)
    if N_pad != N:                       # rare awkward-N case only
        patches = jnp.pad(patches, ((0, 0), (0, N_pad - N), (0, 0)))
        pos_patch = jnp.pad(pos_patch, ((0, N_pad - N), (0, 0)))
    grid = (N_pad // TN, B)              # row tiles outermost, batch fastest-varying

    # VMEM working set: double-buffered streams + single-buffered resident weights.
    ws = (2 * TN * K * 2        # patches tiles (bf16)
          + 2 * TN * E * 4      # pos tiles (f32)
          + 2 * TN * E * 2      # out tiles (bf16)
          + 1 * K * E * 2)      # weights (bf16, resident)
    vmem_limit = None
    if ws + (4 << 20) > (32 << 20):      # would crowd the smallest default scoped limit
        vmem_limit = min(_round_up(2 * ws, 1 << 20), 56 << 20)   # headroom, v7x-safe cap

    cost = pl.CostEstimate(
        flops=2 * B * N_pad * K * E,
        transcendentals=0,
        bytes_accessed=(B * N_pad * K * 2       # patches, streamed once
                        + K * E * 2             # weights, resident
                        + N_pad * E * 4         # positions, resident across batch
                        + B * N_pad * E * 2),   # bf16 output
    )

    def _call(w_spec):
        return pl.pallas_call(
            _patch_embed_kernel,
            out_shape=jax.ShapeDtypeStruct((B, N_pad, E), jnp.bfloat16),
            grid_spec=pltpu.PrefetchScalarGridSpec(
                num_scalar_prefetch=0,
                grid=grid,
                in_specs=[
                    pl.BlockSpec((1, TN, K), lambda nt, b: (b, nt, 0)),
                    w_spec,
                    pl.BlockSpec((TN, E), lambda nt, b: (nt, 0)),
                ],
                out_specs=pl.BlockSpec((1, TN, E), lambda nt, b: (b, nt, 0)),
            ),
            compiler_params=pltpu.CompilerParams(
                dimension_semantics=("parallel", "parallel"),
                vmem_limit_bytes=vmem_limit),
            cost_estimate=cost,
        )(patches, w_mat, pos_patch)

    try:
        # Loop-invariant weights: single pipeline buffer (saves K*E*2 bytes of
        # VMEM; matters on v7x with only 64 MiB physical VMEM).
        patch_out = _call(pl.BlockSpec((K, E), lambda nt, b: (0, 0),
                                       pipeline_mode=pl.Buffered(1)))
    except Exception:
        # Fallback for jax versions without pipeline_mode/Buffered support:
        # default double buffering (correct, slightly more VMEM).
        patch_out = _call(pl.BlockSpec((K, E), lambda nt, b: (0, 0)))

    if N_pad != N:
        patch_out = patch_out[:, :N, :]

    # cls row (cls_token + positions[0]) is batch-independent; it must sit at
    # row 0 (module semantics) and a +1-row-offset kernel store would be
    # sublane-misaligned, so it is prepended here.  The concat doubles as the
    # bf16 -> out_dtype upcast (no separate conversion pass).
    cls_row = cls_token.reshape(1, 1, E).astype(jnp.float32) + pos[0].reshape(1, 1, E)
    cls_rows = jnp.broadcast_to(cls_row, (B, 1, E)).astype(out_dtype)
    return jnp.concatenate([cls_rows, patch_out.astype(out_dtype)], axis=1)  # (B, N+1, E)


def _reference(x, conv_w, conv_b, cls_token, positions, *, patch_size):
    """Pure-JAX (f32) reference matching the PyTorch forward (NCHW input)."""
    B = x.shape[0]
    E = conv_w.shape[0]
    y = jax.lax.conv_general_dilated(
        x, conv_w, window_strides=(patch_size, patch_size), padding="VALID",
        dimension_numbers=("NCHW", "OIHW", "NCHW"))            # (B, E, hp, wp)
    y = y + conv_b.reshape(1, E, 1, 1)
    B_, E_, hp, wp = y.shape
    y = y.reshape(B_, E_, hp * wp).transpose(0, 2, 1)          # (B, N, E)
    cls = jnp.broadcast_to(cls_token.reshape(1, 1, E), (B, 1, E))
    y = jnp.concatenate([cls, y], axis=1)                      # (B, N+1, E)
    return y + positions.reshape(1, -1, E)


if __name__ == "__main__":
    # Small deterministic config: B=2, C=3, img=16, patch=4, emb=32 -> N=16, seq=17
    B, C, IMG, P, E = 2, 3, 16, 4, 32
    key = jax.random.PRNGKey(0)
    kx, kw, kb, kc, kp = jax.random.split(key, 5)

    x = jax.random.normal(kx, (B, C, IMG, IMG), dtype=jnp.float32)
    conv_w = jax.random.normal(kw, (E, C, P, P), dtype=jnp.float32) * 0.02
    conv_b = jax.random.normal(kb, (E,), dtype=jnp.float32) * 0.02
    cls_token = jax.random.normal(kc, (1, 1, E), dtype=jnp.float32)
    positions = jax.random.normal(kp, ((IMG // P) ** 2 + 1, E), dtype=jnp.float32)

    out = patch_embedding(x, conv_w, conv_b, cls_token, positions, patch_size=P)
    out = jax.block_until_ready(out)

    ref = _reference(x, conv_w, conv_b, cls_token, positions, patch_size=P)
    assert out.shape == (B, (IMG // P) ** 2 + 1, E), out.shape
    assert out.dtype == jnp.float32, out.dtype
    # Patches/weights go through bf16 for the MXU and the kernel stores bf16
    # (f32 accumulation + f32 positional add), so expect ~1e-2 absolute error.
    assert jnp.allclose(out, ref, atol=3e-2, rtol=3e-2), "mismatch vs reference (NCHW)"

    # Lane-friendly channels-last path (review item 9) must match as well.
    x_nhwc = jnp.transpose(x, (0, 2, 3, 1))
    out_nhwc = patch_embedding(x_nhwc, conv_w, conv_b, cls_token, positions,
                               patch_size=P, data_format="NHWC")
    out_nhwc = jax.block_until_ready(out_nhwc)
    assert jnp.allclose(out_nhwc, ref, atol=3e-2, rtol=3e-2), "mismatch vs reference (NHWC)"

    print("KERNEL_OK")
</pallas_src>

<mosaic_0001>
module attributes {stable_mosaic.version = 11 : i64} {
  func.func @_patch_embed_kernel(%arg0: i32, %arg1: i32, %arg2: memref<1x16x48xbf16, #tpu.memory_space<vmem>>, %arg3: memref<48x32xbf16, #tpu.memory_space<vmem>>, %arg4: memref<16x32xf32, #tpu.memory_space<vmem>>, %arg5: memref<1x16x32xbf16, #tpu.memory_space<vmem>>) attributes {dimension_semantics = [#tpu.dimension_semantics<parallel>, #tpu.dimension_semantics<parallel>], iteration_bounds = array<i64: 1, 2>, scalar_prefetch = 0 : i64, scratch_operands = 0 : i64, tpu.core_type = #tpu.core_type<tc>, window_params = [{transform_indices = @transform_0, window_bounds = array<i64: 1, 16, 48>}, {pipeline_mode = #tpu.pipeline_mode<synchronous>, transform_indices = @transform_1, window_bounds = array<i64: 48, 32>}, {transform_indices = @transform_2, window_bounds = array<i64: 16, 32>}, {transform_indices = @transform_3, window_bounds = array<i64: 1, 16, 32>}]} {
    %c0 = arith.constant 0 : index
    %c0_0 = arith.constant 0 : index
    %c0_1 = arith.constant 0 : index
    %0 = vector.load %arg2[%c0, %c0_0, %c0_1] : memref<1x16x48xbf16, #tpu.memory_space<vmem>>, vector<1x16x48xbf16>
    %1 = vector.shape_cast %0 : vector<1x16x48xbf16> to vector<16x48xbf16>
    %c0_2 = arith.constant 0 : index
    %c0_3 = arith.constant 0 : index
    %2 = vector.load %arg3[%c0_2, %c0_3] : memref<48x32xbf16, #tpu.memory_space<vmem>>, vector<48x32xbf16>
    %cst = arith.constant dense<0.000000e+00> : vector<16x32xf32>
    %3 = tpu.matmul %1, %2, %cst {dimension_numbers = #tpu.dot_dimension_numbers<[1], [0], [0], [1], [0, 0, 1, 1], [], []>} : vector<16x48xbf16>, vector<48x32xbf16>, vector<16x32xf32> -> vector<16x32xf32>
    %c0_4 = arith.constant 0 : index
    %c0_5 = arith.constant 0 : index
    %4 = vector.load %arg4[%c0_4, %c0_5] : memref<16x32xf32, #tpu.memory_space<vmem>>, vector<16x32xf32>
    %5 = arith.addf %3, %4 : vector<16x32xf32>
    %6 = arith.truncf %5 : vector<16x32xf32> to vector<16x32xbf16>
    %c0_6 = arith.constant 0 : index
    %c0_7 = arith.constant 0 : index
    %c0_8 = arith.constant 0 : index
    %7 = vector.load %arg5[%c0_6, %c0_7, %c0_8] : memref<1x16x32xbf16, #tpu.memory_space<vmem>>, vector<1x16x32xbf16>
    %8 = vector.shape_cast %7 : vector<1x16x32xbf16> to vector<16x32xbf16>
    %9 = vector.shape_cast %6 : vector<16x32xbf16> to vector<1x16x32xbf16>
    tpu.vector_store %arg5[%c0_6, %c0_7, %c0_8], %9 {strides = array<i32>} : memref<1x16x32xbf16, #tpu.memory_space<vmem>>, vector<1x16x32xbf16>,
    return
  }
  func.func @transform_0(%arg0: i32, %arg1: i32) -> (i32, i32, i32) {
    %c0_i32 = arith.constant 0 : i32
    %c0_i32_0 = arith.constant 0 : i32
    return %arg1, %arg0, %c0_i32 : i32, i32, i32
  }
  func.func @transform_1(%arg0: i32, %arg1: i32) -> (i32, i32) {
    %c0_i32 = arith.constant 0 : i32
    %c0_i32_0 = arith.constant 0 : i32
    %c0_i32_1 = arith.constant 0 : i32
    return %c0_i32, %c0_i32_0 : i32, i32
  }
  func.func @transform_2(%arg0: i32, %arg1: i32) -> (i32, i32) {
    %c0_i32 = arith.constant 0 : i32
    %c0_i32_0 = arith.constant 0 : i32
    return %arg0, %c0_i32 : i32, i32
  }
  func.func @transform_3(%arg0: i32, %arg1: i32) -> (i32, i32, i32) {
    %c0_i32 = arith.constant 0 : i32
    %c0_i32_0 = arith.constant 0 : i32
    return %arg1, %arg0, %c0_i32 : i32, i32, i32
  }
}

module attributes {stable_mosaic.version = 11 : i64} {
  func.func @_patch_embed_kernel(%arg0: i32, %arg1: i32, %arg2: memref<1x16x48xbf16, #tpu.memory_space<vmem>>, %arg3: memref<48x32xbf16, #tpu.memory_space<vmem>>, %arg4: memref<16x32xf32, #tpu.memory_space<vmem>>, %arg5: memref<1x16x32xbf16, #tpu.memory_space<vmem>>) attributes {dimension_semantics = [#tpu.dimension_semantics<parallel>, #tpu.dimension_semantics<parallel>], iteration_bounds = array<i64: 1, 2>, scalar_prefetch = 0 : i64, scratch_operands = 0 : i64, tpu.core_type = #tpu.core_type<tc>, window_params = [{transform_indices = @transform_0, window_bounds = array<i64: 1, 16, 48>}, {pipeline_mode = #tpu.pipeline_mode<synchronous>, transform_indices = @transform_1, window_bounds = array<i64: 48, 32>}, {transform_indices = @transform_2, window_bounds = array<i64: 16, 32>}, {transform_indices = @transform_3, window_bounds = array<i64: 1, 16, 32>}]} {
    %c0 = arith.constant 0 : index
    %c0_0 = arith.constant 0 : index
    %c0_1 = arith.constant 0 : index
    %0 = vector.load %arg2[%c0, %c0_0, %c0_1] : memref<1x16x48xbf16, #tpu.memory_space<vmem>>, vector<1x16x48xbf16>
    %1 = vector.shape_cast %0 : vector<1x16x48xbf16> to vector<16x48xbf16>
    %c0_2 = arith.constant 0 : index
    %c0_3 = arith.constant 0 : index
    %2 = vector.load %arg3[%c0_2, %c0_3] : memref<48x32xbf16, #tpu.memory_space<vmem>>, vector<48x32xbf16>
    %cst = arith.constant dense<0.000000e+00> : vector<16x32xf32>
    %3 = tpu.matmul %1, %2, %cst {dimension_numbers = #tpu.dot_dimension_numbers<[1], [0], [0], [1], [0, 0, 1, 1], [], []>} : vector<16x48xbf16>, vector<48x32xbf16>, vector<16x32xf32> -> vector<16x32xf32>
    %c0_4 = arith.constant 0 : index
    %c0_5 = arith.constant 0 : index
    %4 = vector.load %arg4[%c0_4, %c0_5] : memref<16x32xf32, #tpu.memory_space<vmem>>, vector<16x32xf32>
    %5 = arith.addf %3, %4 : vector<16x32xf32>
    %6 = arith.truncf %5 : vector<16x32xf32> to vector<16x32xbf16>
    %c0_6 = arith.constant 0 : index
    %c0_7 = arith.constant 0 : index
    %c0_8 = arith.constant 0 : index
    %7 = vector.load %arg5[%c0_6, %c0_7, %c0_8] : memref<1x16x32xbf16, #tpu.memory_space<vmem>>, vector<1x16x32xbf16>
    %8 = vector.shape_cast %7 : vector<1x16x32xbf16> to vector<16x32xbf16>
    %9 = vector.shape_cast %6 : vector<16x32xbf16> to vector<1x16x32xbf16>
    tpu.vector_store %arg5[%c0_6, %c0_7, %c0_8], %9 {strides = array<i32>} : memref<1x16x32xbf16, #tpu.memory_space<vmem>>, vector<1x16x32xbf16>,
    return
  }
  func.func @transform_0(%arg0: i32, %arg1: i32) -> (i32, i32, i32) {
    %c0_i32 = arith.constant 0 : i32
    %c0_i32_0 = arith.constant 0 : i32
    return %arg1, %arg0, %c0_i32 : i32, i32, i32
  }
  func.func @transform_1(%arg0: i32, %arg1: i32) -> (i32, i32) {
    %c0_i32 = arith.constant 0 : i32
    %c0_i32_0 = arith.constant 0 : i32
    %c0_i32_1 = arith.constant 0 : i32
    return %c0_i32, %c0_i32_0 : i32, i32
  }
  func.func @transform_2(%arg0: i32, %arg1: i32) -> (i32, i32) {
    %c0_i32 = arith.constant 0 : i32
    %c0_i32_0 = arith.constant 0 : i32
    return %arg0, %c0_i32 : i32, i32
  }
  func.func @transform_3(%arg0: i32, %arg1: i32) -> (i32, i32, i32) {
    %c0_i32 = arith.constant 0 : i32
    %c0_i32_0 = arith.constant 0 : i32
    return %arg1, %arg0, %c0_i32 : i32, i32, i32
  }
}

</mosaic_0001>

<bundles_post_ra>
// kernel: tpu_custom_call.1
= control target key start
LH: loop header
LB: loop body
LE: loop exit
PB: predicated region body
PF: predicated region fallthrough
CT: control target
= control target key end

     0   :  { %8 = vsyncpa [#allocation3], 0  ;;  %s756_s0 = inlined_call_operand.vmem [shape: bf16[2,16,48], index: 0, kind: input, shape index: {}]   ;;  %s757_s1 = inlined_call_operand.vmem [shape: bf16[48,32], index: 1, kind: input, shape index: {}]   ;;  %s758_s2 = inlined_call_operand.vmem [shape: f32[16,32], index: 2, kind: input, shape index: {}]   ;;  %s759_s3 = inlined_call_operand.hbm [shape: bf16[2,16,32], index: 3, kind: output, shape index: {}]  }
   0x1   :  { %10 = vsyncpa [#allocation3 + $0x1], 0  ;;  %s627_s12 = smov 0   ;;  %s629_s13 = smov 0  }
   0x2   :  { %s631_s14 = smov 0   ;;  %s633_s15 = smov 0  }
   0x3   :  { %s635_s16 = smov 0   ;;  %s637_s17 = smov 0  }
   0x4 LB: > { %s422_s18 = sadd.s32 4294967295, %s600_s17   ;;  %s423_s19 = sadd.s32 4294967294, %s600_s17   ;;  %s600_s17 = sphi %s637_s17, %s16_s17   ;;  %s596_s16 = sphi %s635_s16, %s766_s16   ;;  %s592_s15 = sphi %s633_s15, %s765_s15   ;;  %s588_s14 = sphi %s631_s14, %s764_s14   ;;  %s584_s13 = sphi %s629_s13, %s763_s13   ;;  %s580_s12 = sphi %s627_s12, %s762_s12  }
   0x5   : > { %s25_s20 = sadd.s32 1, %s596_s16  ;;  %s112_s21 = sadd.s32 1, %s588_s14 }
   0x6   : > { %p26_p0 = scmp.ge.s32.totalorder %s25_s20, 2  ;;  %p122_p1 = scmp.ne.s32.totalorder %s588_s14, %s584_s13 }
   0x7   : > { %p123_p2 = scmp.eq.s32.totalorder %s422_s18, 1  ;;  %p128_p3 = scmp.ne.s32.totalorder %s584_s13, %s580_s12 }
   0x8   : > { %s768_s20 = smov (%p26_p0, %s25_s20), 0  ;;  %p129_p5 = scmp.eq.s32.totalorder %s423_s19, 1 }
   0x9   : > { %p667_p4 = por %p123_p2, %p122_p1  ;;  %s107_s23 = ssub.s32 %s596_s16, %s768_s20 }
   0xa   : > { %p427_p6 = scmp.ge.s32.totalorder %s600_s17, 1  ;;  %p110_p7 = scmp.eq.s32.totalorder %s107_s23, 0 }
   0xb   : > { %p674_p8 = por %p129_p5, %p128_p3  ;;  %p172_p9 = scmp.lt.s32.totalorder %s600_s17, 3 }
   0xc   : > { %s680_s25 = scalar_select %p110_p7, %s588_s14, %s112_s21  }
   0xd   : > { %p173_p10 = pnand %p427_p6, %p172_p9 }
   0xe   : > { %p206_p11 = scmp.lt.s32.totalorder (!%p173_p10), %s592_s15, 1  ;;  %s202_s10 = sand.u32 (!%p173_p10), 1, %s584_s13  }
   0xf   : > { %176 = sbr.rel (%p173_p10) target bundleno = 248 (0xf8), region = 32  ;;  %s428_s19 = sshll.u32 (!%p173_p10), %s202_s10, 3 }
  0x10   : > { %s204_s26 = scalar_lea.vmem (!%p173_p10), [#allocation2], %s428_s19  ;;  %s446_s28 = sshll.u32 (!%p173_p10), %s592_s15, 7 }
  0x11   : > { %s328_s27 = sshll.u32 (!%p173_p10), %s204_s26, 4  ;;  %s709_s4 = scalar_lea.hbm (!%p173_p10), %s759_s3, %s446_s28  ;;  %s704_s27 = int_to_ptr.vmem [resolvable:$true] %s328_s27 }
  0x12   : > { %s711_s5 = scalar_lea.sflag (!%p173_p10), [#allocation3], %s202_s10 }
  0x14   : > { %v520_v0 = vld [vmem:[%s757_s1 + $0x10] sm:$0xff]   ;;  %v602_v1 = vmov 0.0   ;;  %v521_v2 = vld [vmem:[%s757_s1 + $0x8] sm:$0xff]   ;;  %vm603_vm0 = vmmov 0   ;;  %s207_s30 = scalar_select %p206_p11, %s592_s15, 1  ;;  %v522_v3 = vld [vmem:[%s757_s1] sm:$0xff]  }
  0x15   : > { %451 = vmatprep.subr.bf16.mxu0 %v602_v1  ;;  %457 = vmatprep.mubr.msk.bf16.mxu0 %vm603_vm0, %v602_v1  ;;  %vm256_vm1 = vcmask 392192   ;;  %v231_v5 = vld [vmem:[%s758_s2] sm:$0xff]  ;;  %vm309_vm2 = vcmask 257024   ;;  %v232_v9 = vld [vmem:[%s758_s2 + $0x8] sm:$0xff]  ;;  %s604_s15 = smov [#allocation2]  }
  0x16   : > { %452 = vmatpush3.bf16.msra.mxu0 %v520_v0  ;;  %s443_s6 = sshll.u32 %s207_s30, 3  ;;  %s528_s7 = sshll.u32 %s604_s15, 4  ;;  %s529_s7 = int_to_ptr.vmem [resolvable:$false] %s528_s7 }
  0x17   : > { %453 = vmatprep.subr.bf16.mxu0 %v602_v1  ;;  %s213_s9 = scalar_lea.vmem %s756_s0, %s443_s6  ;;  %s524_s6 = scalar_lea.vmem %s704_s27, 128 }
  0x18   : > { %v523_v4 = vld [vmem:[%s213_s9] sm:$0xff]   ;;  %p525_p12 = scmp.ne.s32.totalorder %s704_s27, %s524_s6  ;;  %s530_s8 = scalar_lea.vmem %s529_s7, 256 }
  0x19   : > { %p531_p1 = scmp.lt.s32.totalorder %s704_s27, %s529_s7  ;;  %p532_p2 = scmp.lt.s32.totalorder %s530_s8, %s524_s6 }
  0x1a   : > { %454 = vmatpush3.bf16.msra.mxu0 %v521_v2  ;;  %p526_p13 = pnand %p525_p12, %p667_p4 }
  0x1b   : > { %455 = vmatprep.subr.bf16.mxu0 %v602_v1  ;;  %p533_p3 = por %p532_p2, %p531_p1 }
  0x1c   : > { %p527_p0 = pneg %p526_p13 }
  0x1e   : > { %456 = vmatpush3.bf16.msra.mxu0 %v522_v3  ;;  %p534_p5 = pnand %p533_p3, %p527_p0 }
  0x21   : > { %458 = vmatmul.mubr.msk.bf16.vlgmr.msra.gmra.mxu0 %vm256_vm1, %v523_v4 }
  0xe1   : > { %v294_v6 = vpop.f32.mrf.mxu0 }
  0xe2   : > { %v295_v7 = vadd.f32 %v294_v6, %v231_v5 }
  0xe3   : > { %v459_v8 = vpop.f32.mrf.mxu0 }
  0xe4   : > { %v444_v10 = vpack.c.bf16 %v295_v7, %v295_v7 }
  0xe5   : > { %v297_v11 = vpop.f32.mrf.mxu0 }
  0xe6   : > { %310 = vst.msk [vmem:[%s204_s26] sm:$0xf] %vm309_vm2, %v444_v10  ;;  %v298_v12 = vadd.f32 %v297_v11, %v232_v9 }
  0xe7   : > { %v460_v13 = vpop.f32.mrf.mxu0 }
  0xe8   : > { %v445_v14 = vpack.c.bf16 %v298_v12, %v298_v12 }
  0xea   : > { %311 = vst.msk [vmem:[%s204_s26 + $0x4] sm:$0xf] %vm309_vm2, %v445_v14 }
  0xeb   : > { %537 = shalt.err (!%p534_p5)
}
  0xec   : > { %s538_s9 = scalar_lea.hbm %s709_s4, 128  ;;  %s542_s18 = scalar_lea.hbm %s759_s3, 256 }
  0xed   : > { %p539_p6 = scmp.ne.s32.totalorder %s709_s4, %s538_s9  ;;  %p543_p10 = scmp.lt.s32.totalorder %s709_s4, %s759_s3 }
  0xee   : > { %p544_p11 = scmp.lt.s32.totalorder %s542_s18, %s538_s9 }
  0xef   : > { %p540_p7 = pnand %p539_p6, %p667_p4 }
  0xf0   : > { %p545_p12 = por %p544_p11, %p543_p10 }
  0xf1   : > { %p541_p9 = pneg %p540_p7 }
  0xf3   : > { %p546_p13 = pnand %p545_p12, %p541_p9 }
  0xf5   : > { %549 = shalt.err (!%p546_p13)
}
  0xf6   : > { %s605_s23 = smov 64   ;;  %s606_s26 = smov 4  }
  0xf7   : > { %461 = dma.vmem_to_hbm [thread:$0]  (%p667_p4), %s704_s27, 128, %s709_s4, %s711_s5, %s605_s23, %s605_s23, %s606_s26  }
  0xf8 PF: > { %p467_p0 = scmp.ge.s32.totalorder %s600_s17, 2  ;;  %s343_s28 = sand.u32 1, %s580_s12  }
  0xf9   : > { %s344_s29 = scalar_lea.sflag [#allocation3], %s343_s28 }
  0xfa   : > { %p464_p1 = pnand %p467_p0, %p674_p8 }
  0xfc   : > { %p465_p2 = pneg %p464_p1 }
  0xfe   : > { %575 = dma.done.wait (%p465_p2), %s344_s29, 128  }
  0xff   : > { %577 = vsyncadd (%p465_p2), %s344_s29, 4294967168  ;;  %s16_s17 = sadd.s32 1, %s600_s17   ;;  %s762_s12 = smov %s584_s13 }
 0x100   : > { %p13_p3 = scmp.ge.s32.totalorder %s16_s17, 4   ;;  %s763_s13 = smov %s588_s14 }
 0x101   : > { %s764_s14 = smov %s680_s25  ;;  %s765_s15 = smov %s596_s16 }
 0x102   : > { %s766_s16 = smov %s768_s20  ;;  %15 = sbr.rel (!%p13_p3) target bundleno = 4 (0x4), region = 70 }
 0x107   :  { %349 = vsyncpa [#allocation3], 1 }
 0x108   :  { %351 = vsyncpa [#allocation3 + $0x1], 1 }

// kernel: tpu_custom_call.1
= control target key start
LH: loop header
LB: loop body
LE: loop exit
PB: predicated region body
PF: predicated region fallthrough
CT: control target
= control target key end

     0   :  { %8 = vsyncpa [#allocation3], 0  ;;  %s756_s0 = inlined_call_operand.vmem [shape: bf16[2,16,48], index: 0, kind: input, shape index: {}]   ;;  %s757_s1 = inlined_call_operand.vmem [shape: bf16[48,32], index: 1, kind: input, shape index: {}]   ;;  %s758_s2 = inlined_call_operand.vmem [shape: f32[16,32], index: 2, kind: input, shape index: {}]   ;;  %s759_s3 = inlined_call_operand.hbm [shape: bf16[2,16,32], index: 3, kind: output, shape index: {}]  }
   0x1   :  { %10 = vsyncpa [#allocation3 + $0x1], 0  ;;  %s627_s12 = smov 0   ;;  %s629_s13 = smov 0  }
   0x2   :  { %s631_s14 = smov 0   ;;  %s633_s15 = smov 0  }
   0x3   :  { %s635_s16 = smov 0   ;;  %s637_s17 = smov 0  }
   0x4 LB: > { %s422_s18 = sadd.s32 4294967295, %s600_s17   ;;  %s423_s19 = sadd.s32 4294967294, %s600_s17   ;;  %s600_s17 = sphi %s637_s17, %s16_s17   ;;  %s596_s16 = sphi %s635_s16, %s766_s16   ;;  %s592_s15 = sphi %s633_s15, %s765_s15   ;;  %s588_s14 = sphi %s631_s14, %s764_s14   ;;  %s584_s13 = sphi %s629_s13, %s763_s13   ;;  %s580_s12 = sphi %s627_s12, %s762_s12  }
   0x5   : > { %s25_s20 = sadd.s32 1, %s596_s16  ;;  %s112_s21 = sadd.s32 1, %s588_s14 }
   0x6   : > { %p26_p0 = scmp.ge.s32.totalorder %s25_s20, 2  ;;  %p122_p1 = scmp.ne.s32.totalorder %s588_s14, %s584_s13 }
   0x7   : > { %p123_p2 = scmp.eq.s32.totalorder %s422_s18, 1  ;;  %p128_p3 = scmp.ne.s32.totalorder %s584_s13, %s580_s12 }
   0x8   : > { %s768_s20 = smov (%p26_p0, %s25_s20), 0  ;;  %p129_p5 = scmp.eq.s32.totalorder %s423_s19, 1 }
   0x9   : > { %p667_p4 = por %p123_p2, %p122_p1  ;;  %s107_s23 = ssub.s32 %s596_s16, %s768_s20 }
   0xa   : > { %p427_p6 = scmp.ge.s32.totalorder %s600_s17, 1  ;;  %p110_p7 = scmp.eq.s32.totalorder %s107_s23, 0 }
   0xb   : > { %p674_p8 = por %p129_p5, %p128_p3  ;;  %p172_p9 = scmp.lt.s32.totalorder %s600_s17, 3 }
   0xc   : > { %s680_s25 = scalar_select %p110_p7, %s588_s14, %s112_s21  }
   0xd   : > { %p173_p10 = pnand %p427_p6, %p172_p9 }
   0xe   : > { %p206_p11 = scmp.lt.s32.totalorder (!%p173_p10), %s592_s15, 1  ;;  %s202_s10 = sand.u32 (!%p173_p10), 1, %s584_s13  }
   0xf   : > { %176 = sbr.rel (%p173_p10) target bundleno = 248 (0xf8), region = 32  ;;  %s428_s19 = sshll.u32 (!%p173_p10), %s202_s10, 3 }
  0x10   : > { %s204_s26 = scalar_lea.vmem (!%p173_p10), [#allocation2], %s428_s19  ;;  %s446_s28 = sshll.u32 (!%p173_p10), %s592_s15, 7 }
  0x11   : > { %s328_s27 = sshll.u32 (!%p173_p10), %s204_s26, 4  ;;  %s709_s4 = scalar_lea.hbm (!%p173_p10), %s759_s3, %s446_s28  ;;  %s704_s27 = int_to_ptr.vmem [resolvable:$true] %s328_s27 }
  0x12   : > { %s711_s5 = scalar_lea.sflag (!%p173_p10), [#allocation3], %s202_s10 }
  0x14   : > { %v520_v0 = vld [vmem:[%s757_s1 + $0x10] sm:$0xff]   ;;  %v602_v1 = vmov 0.0   ;;  %v521_v2 = vld [vmem:[%s757_s1 + $0x8] sm:$0xff]   ;;  %vm603_vm0 = vmmov 0   ;;  %s207_s30 = scalar_select %p206_p11, %s592_s15, 1  ;;  %v522_v3 = vld [vmem:[%s757_s1] sm:$0xff]  }
  0x15   : > { %451 = vmatprep.subr.bf16.mxu0 %v602_v1  ;;  %457 = vmatprep.mubr.msk.bf16.mxu0 %vm603_vm0, %v602_v1  ;;  %vm256_vm1 = vcmask 392192   ;;  %v231_v5 = vld [vmem:[%s758_s2] sm:$0xff]  ;;  %vm309_vm2 = vcmask 257024   ;;  %v232_v9 = vld [vmem:[%s758_s2 + $0x8] sm:$0xff]  ;;  %s604_s15 = smov [#allocation2]  }
  0x16   : > { %452 = vmatpush3.bf16.msra.mxu0 %v520_v0  ;;  %s443_s6 = sshll.u32 %s207_s30, 3  ;;  %s528_s7 = sshll.u32 %s604_s15, 4  ;;  %s529_s7 = int_to_ptr.vmem [resolvable:$false] %s528_s7 }
  0x17   : > { %453 = vmatprep.subr.bf16.mxu0 %v602_v1  ;;  %s213_s9 = scalar_lea.vmem %s756_s0, %s443_s6  ;;  %s524_s6 = scalar_lea.vmem %s704_s27, 128 }
  0x18   : > { %v523_v4 = vld [vmem:[%s213_s9] sm:$0xff]   ;;  %p525_p12 = scmp.ne.s32.totalorder %s704_s27, %s524_s6  ;;  %s530_s8 = scalar_lea.vmem %s529_s7, 256 }
  0x19   : > { %p531_p1 = scmp.lt.s32.totalorder %s704_s27, %s529_s7  ;;  %p532_p2 = scmp.lt.s32.totalorder %s530_s8, %s524_s6 }
  0x1a   : > { %454 = vmatpush3.bf16.msra.mxu0 %v521_v2  ;;  %p526_p13 = pnand %p525_p12, %p667_p4 }
  0x1b   : > { %455 = vmatprep.subr.bf16.mxu0 %v602_v1  ;;  %p533_p3 = por %p532_p2, %p531_p1 }
  0x1c   : > { %p527_p0 = pneg %p526_p13 }
  0x1e   : > { %456 = vmatpush3.bf16.msra.mxu0 %v522_v3  ;;  %p534_p5 = pnand %p533_p3, %p527_p0 }
  0x21   : > { %458 = vmatmul.mubr.msk.bf16.vlgmr.msra.gmra.mxu0 %vm256_vm1, %v523_v4 }
  0xe1   : > { %v294_v6 = vpop.f32.mrf.mxu0 }
  0xe2   : > { %v295_v7 = vadd.f32 %v294_v6, %v231_v5 }
  0xe3   : > { %v459_v8 = vpop.f32.mrf.mxu0 }
  0xe4   : > { %v444_v10 = vpack.c.bf16 %v295_v7, %v295_v7 }
  0xe5   : > { %v297_v11 = vpop.f32.mrf.mxu0 }
  0xe6   : > { %310 = vst.msk [vmem:[%s204_s26] sm:$0xf] %vm309_vm2, %v444_v10  ;;  %v298_v12 = vadd.f32 %v297_v11, %v232_v9 }
  0xe7   : > { %v460_v13 = vpop.f32.mrf.mxu0 }
  0xe8   : > { %v445_v14 = vpack.c.bf16 %v298_v12, %v298_v12 }
  0xea   : > { %311 = vst.msk [vmem:[%s204_s26 + $0x4] sm:$0xf] %vm309_vm2, %v445_v14 }
  0xeb   : > { %537 = shalt.err (!%p534_p5)
}
  0xec   : > { %s538_s9 = scalar_lea.hbm %s709_s4, 128  ;;  %s542_s18 = scalar_lea.hbm %s759_s3, 256 }
  0xed   : > { %p539_p6 = scmp.ne.s32.totalorder %s709_s4, %s538_s9  ;;  %p543_p10 = scmp.lt.s32.totalorder %s709_s4, %s759_s3 }
  0xee   : > { %p544_p11 = scmp.lt.s32.totalorder %s542_s18, %s538_s9 }
  0xef   : > { %p540_p7 = pnand %p539_p6, %p667_p4 }
  0xf0   : > { %p545_p12 = por %p544_p11, %p543_p10 }
  0xf1   : > { %p541_p9 = pneg %p540_p7 }
  0xf3   : > { %p546_p13 = pnand %p545_p12, %p541_p9 }
  0xf5   : > { %549 = shalt.err (!%p546_p13)
}
  0xf6   : > { %s605_s23 = smov 64   ;;  %s606_s26 = smov 4  }
  0xf7   : > { %461 = dma.vmem_to_hbm [thread:$0]  (%p667_p4), %s704_s27, 128, %s709_s4, %s711_s5, %s605_s23, %s605_s23, %s606_s26  }
  0xf8 PF: > { %p467_p0 = scmp.ge.s32.totalorder %s600_s17, 2  ;;  %s343_s28 = sand.u32 1, %s580_s12  }
  0xf9   : > { %s344_s29 = scalar_lea.sflag [#allocation3], %s343_s28 }
  0xfa   : > { %p464_p1 = pnand %p467_p0, %p674_p8 }
  0xfc   : > { %p465_p2 = pneg %p464_p1 }
  0xfe   : > { %575 = dma.done.wait (%p465_p2), %s344_s29, 128  }
  0xff   : > { %577 = vsyncadd (%p465_p2), %s344_s29, 4294967168  ;;  %s16_s17 = sadd.s32 1, %s600_s17   ;;  %s762_s12 = smov %s584_s13 }
 0x100   : > { %p13_p3 = scmp.ge.s32.totalorder %s16_s17, 4   ;;  %s763_s13 = smov %s588_s14 }
 0x101   : > { %s764_s14 = smov %s680_s25  ;;  %s765_s15 = smov %s596_s16 }
 0x102   : > { %s766_s16 = smov %s768_s20  ;;  %15 = sbr.rel (!%p13_p3) target bundleno = 4 (0x4), region = 70 }
 0x107   :  { %349 = vsyncpa [#allocation3], 1 }
 0x108   :  { %351 = vsyncpa [#allocation3 + $0x1], 1 }

</bundles_post_ra>
